<compile_context>
chip_gen: v6e
topology: v6e:2x2x1
jax: 0.10.0
libtpu: 0.0.40
codegen_flags: <defaults>
</compile_context>

<pallas_src>
import functools

import jax
import jax.numpy as jnp
from jax.experimental import pallas as pl
from jax.experimental.pallas import tpu as pltpu


def _round_up(v, m):
    return ((v + m - 1) // m) * m


def _choose_block_graphs(B, N, H):
    """Largest divisor of B whose input block (x f32 + adj bf16) stays small
    enough that double-buffering fits comfortably in scoped VMEM on every TPU
    generation (v7x: 64 MiB total / 32 MiB default scoped)."""
    budget = 2 * 1024 * 1024          # bytes per block (pipeline doubles it)
    best = 1
    for d in range(1, B + 1):
        if B % d:
            continue
        if (d * N) % 8 and d != B:    # flat (Bt*N, 2) assignment block tiling
            continue
        if d * N * (4 * H + 2 * N) <= budget:
            best = d
    return best


# ----------------------------- Pallas kernel -------------------------------
def gib_kernel(x_ref, adjT_ref,
               c1w_ref, c1b_ref, c2w_ref, c2b_ref,
               l1w_ref, l1b_ref, l2w_ref, l2b_ref,
               slab_ref, assign_ref):
    Bt, N, H = x_ref.shape
    C = l2w_ref.shape[1]
    P = slab_ref.shape[2]

    x3 = x_ref[...]                                   # (Bt, N, H) f32
    xf = x3.reshape(Bt * N, H)                        # flat node view

    c1w = c1w_ref[...]; c1b = c1b_ref[...]
    c2w = c2w_ref[...]; c2b = c2b_ref[...]
    l1w = l1w_ref[...]; l1b = l1b_ref[...]
    l2w = l2w_ref[...]; l2b = l2b_ref[...]

    # --- assignment(x) = softmax(cluster2(relu(cluster1(x))), dim=1) ---
    # 2-class softmax == sigmoid of the logit difference (one exp instead of
    # two exps + max + sum).
    z1 = jnp.maximum(
        jnp.dot(xf, c1w, preferred_element_type=jnp.float32) + c1b, 0.0)
    logits = jnp.dot(z1, c2w, preferred_element_type=jnp.float32) + c2b   # (Bt*N, 2)
    p0 = 1.0 / (1.0 + jnp.exp(logits[:, 1:2] - logits[:, 0:1]))
    assign_flat = jnp.concatenate([p0, 1.0 - p0], axis=1)                 # (Bt*N, 2)
    assign_ref[...] = assign_flat

    # --- message passing: prob_sum[g,v,k] = sum_u adj[g,u,v] * assign[g,u,k]
    # (adjacency is pre-transposed in the wrapper -> row-major batched matmul)
    assign = assign_flat.reshape(Bt, N, 2)
    adjT = adjT_ref[...].astype(jnp.float32)                              # (Bt, N, N)
    prob_sum = jnp.einsum("gvu,guk->gvk", adjT, assign,
                          preferred_element_type=jnp.float32)             # (Bt, N, 2)

    # --- diagonal of the L1-row-normalized 2x2 "new adjacency" ---
    # new_adj[k,j] = sum_v prob_sum[v,k]*assign[v,j]; everything is >= 0 and
    # assign rows sum to 1, so the L1 row norm is just sum_v prob_sum[v,k].
    diag = jnp.sum(prob_sum * assign, axis=1)                             # (Bt, 2)
    rowsum = jnp.sum(prob_sum, axis=1)                                    # (Bt, 2)
    norm_diag = diag / jnp.maximum(rowsum, 1e-5)                          # (Bt, 2)

    # --- pooled embeddings (mean pooling) ---
    inv_n = 1.0 / N
    pos_emb = jnp.sum(assign[:, :, 0:1] * x3, axis=1) * inv_n             # (Bt, H)
    g_emb = jnp.sum(x3, axis=1) * inv_n                                   # (Bt, H)

    # --- prediction head (eval mode: dropout is identity), both embeddings
    #     through a single stacked matmul ---
    embs = jnp.concatenate([pos_emb, g_emb], axis=0)                      # (2*Bt, H)
    h = jnp.maximum(
        jnp.dot(embs, l1w, preferred_element_type=jnp.float32) + l1b, 0.0)
    preds = jnp.dot(h, l2w, preferred_element_type=jnp.float32) + l2b     # (2*Bt, C)
    sg_pred = preds[:Bt]
    g_pred = preds[Bt:]

    # --- fused lane-dense output slab:
    #     [sg_pred | g_pred | sg_emb | g_emb | norm_diag | zero pad] ---
    used = 2 * C + 2 * H + 2
    parts = [sg_pred, g_pred, pos_emb, g_emb, norm_diag]
    if P > used:
        parts.append(jnp.zeros((Bt, P - used), jnp.float32))
    slab_ref[:, 0, :] = jnp.concatenate(parts, axis=1)                    # (Bt, P)


# ------------------------------ wrapper -------------------------------------
@functools.partial(jax.jit, static_argnames=("hidden", "num_classes"))
def gib_forward(x, adj, params, *, hidden, num_classes):
    B, N, H = x.shape
    C = num_classes
    assert H == hidden

    Bt = _choose_block_graphs(B, N, H)
    nblocks = B // Bt
    P = _round_up(2 * C + 2 * H + 2, 128)

    # 0/1 adjacency: bf16 transport is exact and halves the dominant HBM
    # stream; pre-transpose so the in-kernel message pass is row-major.
    adjT = jnp.swapaxes(adj, 1, 2).astype(jnp.bfloat16)

    full = lambda shape: pl.BlockSpec(shape, lambda b: (0,) * len(shape))

    in_specs = [
        pl.BlockSpec((Bt, N, H), lambda b: (b, 0, 0)),       # x
        pl.BlockSpec((Bt, N, N), lambda b: (b, 0, 0)),       # adj^T (bf16)
        full((H, H)), full((1, H)),                          # cluster1
        full((H, 2)), full((1, 2)),                          # cluster2
        full((H, H)), full((1, H)),                          # lin1
        full((H, C)), full((1, C)),                          # lin2
    ]
    out_shape = (
        jax.ShapeDtypeStruct((B, 1, P), jnp.float32),        # fused slab
        jax.ShapeDtypeStruct((B * N, 2), jnp.float32),       # assignment (flat)
    )
    out_specs = (
        pl.BlockSpec((Bt, 1, P), lambda b: (b, 0, 0)),
        pl.BlockSpec((Bt * N, 2), lambda b: (b, 0)),
    )

    n_params = 2 * H * H + 2 * H + H * 2 + 2 + H * C + C
    cost = pl.CostEstimate(
        flops=B * N * (2 * H * H + 4 * H + 4 * N)
              + 2 * B * (2 * H * H + 2 * H * C),
        transcendentals=B * N,
        bytes_accessed=B * N * (4 * H + 2 * N) + B * (4 * P + 8 * N)
                       + nblocks * 4 * n_params,
    )

    slab, assign_flat = pl.pallas_call(
        gib_kernel,
        out_shape=out_shape,
        grid=(nblocks,),
        in_specs=in_specs,
        out_specs=out_specs,
        compiler_params=pltpu.CompilerParams(
            dimension_semantics=("parallel",)),
        cost_estimate=cost,
    )(x, adjT,
      params["c1w"], params["c1b"], params["c2w"], params["c2b"],
      params["l1w"], params["l1b"], params["l2w"], params["l2b"])

    slab = slab[:, 0, :]
    sg_pred = slab[:, 0:C]
    g_pred = slab[:, C:2 * C]
    sg_embed = slab[:, 2 * C:2 * C + H]
    g_embed = slab[:, 2 * C + H:2 * C + 2 * H]
    norm_diag = slab[:, 2 * C + 2 * H:2 * C + 2 * H + 2]

    assignment = assign_flat.reshape(B, N, 2)
    pos_penalty = jnp.mean((norm_diag - 1.0) ** 2)
    selected = 1.0 - jnp.argmax(assignment, axis=-1).astype(jnp.float32)

    return {
        "sg_pred": sg_pred,                   # (B, C)
        "g_pred": g_pred,                     # (B, C)
        "sg_embed": sg_embed,                 # (B, H)
        "g_embed": g_embed,                   # (B, H)
        "pos_penalty": pos_penalty,           # scalar
        "assignment": assignment,             # (B, N, 2)
        "n_embed": x,                         # (B, N, H)
        "selected_nodes": selected,           # (B, N)
    }


# --------------------------- pure-JAX reference ------------------------------
def gib_reference(x, adj, params):
    z1 = jnp.maximum(x @ params["c1w"] + params["c1b"], 0.0)
    logits = z1 @ params["c2w"] + params["c2b"]
    assign = jax.nn.softmax(logits, axis=-1)                       # (B, N, 2)
    prob_sum = jnp.einsum("buv,buk->bvk", adj, assign)             # (B, N, 2)
    new_adj = jnp.einsum("bvi,bvj->bij", prob_sum, assign)         # (B, 2, 2)
    l1 = jnp.sum(jnp.abs(new_adj), axis=2, keepdims=True)
    norm_adj = new_adj / jnp.maximum(l1, 1e-5)
    norm_diag = jnp.stack([norm_adj[:, 0, 0], norm_adj[:, 1, 1]], axis=1)
    pos_penalty = jnp.mean((norm_diag - 1.0) ** 2)
    filt = assign[..., 0:1] * x
    pos_emb = jnp.mean(filt, axis=1)
    g_emb = jnp.mean(x, axis=1)

    def predict(e):
        h = jnp.maximum(e @ params["l1w"] + params["l1b"], 0.0)
        return h @ params["l2w"] + params["l2b"]

    return {
        "sg_pred": predict(pos_emb),
        "g_pred": predict(g_emb),
        "sg_embed": pos_emb,
        "g_embed": g_emb,
        "pos_penalty": pos_penalty,
        "assignment": assign,
        "selected_nodes": 1.0 - jnp.argmax(assign, axis=-1).astype(jnp.float32),
    }


# -------------------------------- main ---------------------------------------
if __name__ == "__main__":
    B, N, H, C = 2, 8, 32, 4    # batch graphs, nodes/graph, hidden, num_classes

    key = jax.random.PRNGKey(0)
    ks = jax.random.split(key, 12)

    def linear_init(kw, kb, fan_in, fan_out):
        bound = 1.0 / jnp.sqrt(jnp.float32(fan_in))
        w = jax.random.uniform(kw, (fan_in, fan_out), jnp.float32, -bound, bound)
        b = jax.random.uniform(kb, (1, fan_out), jnp.float32, -bound, bound)
        return w, b

    c1w, c1b = linear_init(ks[0], ks[1], H, H)
    c2w, c2b = linear_init(ks[2], ks[3], H, 2)
    l1w, l1b = linear_init(ks[4], ks[5], H, H)
    l2w, l2b = linear_init(ks[6], ks[7], H, C)
    params = dict(c1w=c1w, c1b=c1b, c2w=c2w, c2b=c2b,
                  l1w=l1w, l1b=l1b, l2w=l2w, l2b=l2b)

    # node features (post-GNN, since conv1/convs are abstract) and adjacency
    x = jax.random.normal(ks[8], (B, N, H), jnp.float32)
    adj = (jax.random.uniform(ks[9], (B, N, N)) < 0.4).astype(jnp.float32)

    out = gib_forward(x, adj, params, hidden=H, num_classes=C)
    jax.block_until_ready(out)

    ref = gib_reference(x, adj, params)
    for k in ("sg_pred", "g_pred", "sg_embed", "g_embed", "assignment",
              "pos_penalty", "selected_nodes"):
        a = jnp.asarray(out[k]); b = jnp.asarray(ref[k])
        assert a.shape == b.shape, (k, a.shape, b.shape)
        assert jnp.allclose(a, b, atol=1e-4, rtol=1e-4), (
            k, float(jnp.max(jnp.abs(a - b))))

    print("KERNEL_OK")
</pallas_src>

<mosaic_0001>
module attributes {stable_mosaic.version = 11 : i64} {
  func.func @gib_kernel(%arg0: i32, %arg1: memref<2x8x32xf32, #tpu.memory_space<vmem>>, %arg2: memref<2x8x8xbf16, #tpu.memory_space<vmem>>, %arg3: memref<32x32xf32, #tpu.memory_space<vmem>>, %arg4: memref<1x32xf32, #tpu.memory_space<vmem>>, %arg5: memref<32x2xf32, #tpu.memory_space<vmem>>, %arg6: memref<1x2xf32, #tpu.memory_space<vmem>>, %arg7: memref<32x32xf32, #tpu.memory_space<vmem>>, %arg8: memref<1x32xf32, #tpu.memory_space<vmem>>, %arg9: memref<32x4xf32, #tpu.memory_space<vmem>>, %arg10: memref<1x4xf32, #tpu.memory_space<vmem>>, %arg11: memref<2x1x128xf32, #tpu.memory_space<vmem>>, %arg12: memref<16x2xf32, #tpu.memory_space<vmem>>) attributes {dimension_semantics = [#tpu.dimension_semantics<parallel>], iteration_bounds = array<i64: 1>, scalar_prefetch = 0 : i64, scratch_operands = 0 : i64, tpu.core_type = #tpu.core_type<tc>, window_params = [{transform_indices = @transform_0, window_bounds = array<i64: 2, 8, 32>}, {transform_indices = @transform_1, window_bounds = array<i64: 2, 8, 8>}, {pipeline_mode = #tpu.pipeline_mode<synchronous>, transform_indices = @transform_2, window_bounds = array<i64: 32, 32>}, {pipeline_mode = #tpu.pipeline_mode<synchronous>, transform_indices = @transform_3, window_bounds = array<i64: 1, 32>}, {pipeline_mode = #tpu.pipeline_mode<synchronous>, transform_indices = @transform_4, window_bounds = array<i64: 32, 2>}, {pipeline_mode = #tpu.pipeline_mode<synchronous>, transform_indices = @transform_5, window_bounds = array<i64: 1, 2>}, {pipeline_mode = #tpu.pipeline_mode<synchronous>, transform_indices = @transform_6, window_bounds = array<i64: 32, 32>}, {pipeline_mode = #tpu.pipeline_mode<synchronous>, transform_indices = @transform_7, window_bounds = array<i64: 1, 32>}, {pipeline_mode = #tpu.pipeline_mode<synchronous>, transform_indices = @transform_8, window_bounds = array<i64: 32, 4>}, {pipeline_mode = #tpu.pipeline_mode<synchronous>, transform_indices = @transform_9, window_bounds = array<i64: 1, 4>}, {transform_indices = @transform_10, window_bounds = array<i64: 2, 1, 128>}, {transform_indices = @transform_11, window_bounds = array<i64: 16, 2>}]} {
    %c0 = arith.constant 0 : index
    %c0_0 = arith.constant 0 : index
    %c0_1 = arith.constant 0 : index
    %0 = vector.load %arg1[%c0, %c0_0, %c0_1] : memref<2x8x32xf32, #tpu.memory_space<vmem>>, vector<2x8x32xf32>
    %1 = vector.shape_cast %0 : vector<2x8x32xf32> to vector<16x32xf32>
    %c0_2 = arith.constant 0 : index
    %c0_3 = arith.constant 0 : index
    %2 = vector.load %arg3[%c0_2, %c0_3] : memref<32x32xf32, #tpu.memory_space<vmem>>, vector<32x32xf32>
    %c0_4 = arith.constant 0 : index
    %c0_5 = arith.constant 0 : index
    %3 = vector.load %arg4[%c0_4, %c0_5] : memref<1x32xf32, #tpu.memory_space<vmem>>, vector<1x32xf32>
    %c0_6 = arith.constant 0 : index
    %c0_7 = arith.constant 0 : index
    %4 = vector.load %arg5[%c0_6, %c0_7] : memref<32x2xf32, #tpu.memory_space<vmem>>, vector<32x2xf32>
    %c0_8 = arith.constant 0 : index
    %c0_9 = arith.constant 0 : index
    %5 = vector.load %arg6[%c0_8, %c0_9] : memref<1x2xf32, #tpu.memory_space<vmem>>, vector<1x2xf32>
    %c0_10 = arith.constant 0 : index
    %c0_11 = arith.constant 0 : index
    %6 = vector.load %arg7[%c0_10, %c0_11] : memref<32x32xf32, #tpu.memory_space<vmem>>, vector<32x32xf32>
    %c0_12 = arith.constant 0 : index
    %c0_13 = arith.constant 0 : index
    %7 = vector.load %arg8[%c0_12, %c0_13] : memref<1x32xf32, #tpu.memory_space<vmem>>, vector<1x32xf32>
    %c0_14 = arith.constant 0 : index
    %c0_15 = arith.constant 0 : index
    %8 = vector.load %arg9[%c0_14, %c0_15] : memref<32x4xf32, #tpu.memory_space<vmem>>, vector<32x4xf32>
    %c0_16 = arith.constant 0 : index
    %c0_17 = arith.constant 0 : index
    %9 = vector.load %arg10[%c0_16, %c0_17] : memref<1x4xf32, #tpu.memory_space<vmem>>, vector<1x4xf32>
    %cst = arith.constant dense<0.000000e+00> : vector<16x32xf32>
    %10 = tpu.matmul %1, %2, %cst {dimension_numbers = #tpu.dot_dimension_numbers<[1], [0], [0], [1], [0, 0, 1, 1], [], []>} : vector<16x32xf32>, vector<32x32xf32>, vector<16x32xf32> -> vector<16x32xf32>
    %11 = vector.broadcast %3 : vector<1x32xf32> to vector<16x32xf32>
    %12 = arith.addf %10, %11 : vector<16x32xf32>
    %cst_18 = arith.constant 0.000000e+00 : f32
    %13 = vector.broadcast %cst_18 : f32 to vector<16x32xf32>
    %14 = arith.maximumf %12, %13 : vector<16x32xf32>
    %cst_19 = arith.constant dense<0.000000e+00> : vector<16x2xf32>
    %15 = tpu.matmul %14, %4, %cst_19 {dimension_numbers = #tpu.dot_dimension_numbers<[1], [0], [0], [1], [0, 0, 1, 1], [], []>} : vector<16x32xf32>, vector<32x2xf32>, vector<16x2xf32> -> vector<16x2xf32>
    %16 = vector.broadcast %5 : vector<1x2xf32> to vector<16x2xf32>
    %17 = arith.addf %15, %16 : vector<16x2xf32>
    %18 = vector.extract_strided_slice %17 {offsets = [0, 1], sizes = [16, 1], strides = [1, 1]} : vector<16x2xf32> to vector<16x1xf32>
    %19 = vector.extract_strided_slice %17 {offsets = [0, 0], sizes = [16, 1], strides = [1, 1]} : vector<16x2xf32> to vector<16x1xf32>
    %20 = arith.subf %18, %19 : vector<16x1xf32>
    %21 = math.exp %20 : vector<16x1xf32>
    %cst_20 = arith.constant 1.000000e+00 : f32
    %22 = vector.broadcast %cst_20 : f32 to vector<16x1xf32>
    %23 = arith.addf %22, %21 : vector<16x1xf32>
    %cst_21 = arith.constant 1.000000e+00 : f32
    %24 = vector.broadcast %cst_21 : f32 to vector<16x1xf32>
    %25 = arith.divf %24, %23 : vector<16x1xf32>
    %cst_22 = arith.constant 1.000000e+00 : f32
    %26 = vector.broadcast %cst_22 : f32 to vector<16x1xf32>
    %27 = arith.subf %26, %25 : vector<16x1xf32>
    %28 = tpu.concatenate %25, %27 in 1 : vector<16x1xf32>, vector<16x1xf32> -> vector<16x2xf32>
    %c0_23 = arith.constant 0 : index
    %c0_24 = arith.constant 0 : index
    %29 = vector.load %arg12[%c0_23, %c0_24] : memref<16x2xf32, #tpu.memory_space<vmem>>, vector<16x2xf32>
    tpu.vector_store %arg12[%c0_23, %c0_24], %28 {strides = array<i32>} : memref<16x2xf32, #tpu.memory_space<vmem>>, vector<16x2xf32>,
    %30 = vector.shape_cast %28 : vector<16x2xf32> to vector<2x8x2xf32>
    %c0_25 = arith.constant 0 : index
    %c0_26 = arith.constant 0 : index
    %c0_27 = arith.constant 0 : index
    %31 = vector.load %arg2[%c0_25, %c0_26, %c0_27] : memref<2x8x8xbf16, #tpu.memory_space<vmem>>, vector<2x8x8xbf16>
    %32 = arith.extf %31 : vector<2x8x8xbf16> to vector<2x8x8xf32>
    "tpu.trace_start"() <{level = 10 : i32, message = "gvu,guk->gvk"}> : () -> ()
    %cst_28 = arith.constant dense<0.000000e+00> : vector<2x8x2xf32>
    %33 = tpu.matmul %32, %30, %cst_28 {dimension_numbers = #tpu.dot_dimension_numbers<[2], [1], [1], [2], [0, 0, 0, 1, 1, 2], [0], [0]>} : vector<2x8x8xf32>, vector<2x8x2xf32>, vector<2x8x2xf32> -> vector<2x8x2xf32>
    "tpu.trace_stop"() : () -> ()
    %34 = arith.mulf %33, %30 : vector<2x8x2xf32>
    %cst_29 = arith.constant dense<0.000000e+00> : vector<2x2xf32>
    %35 = vector.multi_reduction <add>, %34, %cst_29 [1] : vector<2x8x2xf32> to vector<2x2xf32>
    %cst_30 = arith.constant dense<0.000000e+00> : vector<2x2xf32>
    %36 = vector.multi_reduction <add>, %33, %cst_30 [1] : vector<2x8x2xf32> to vector<2x2xf32>
    %cst_31 = arith.constant 9.99999974E-6 : f32
    %37 = vector.broadcast %cst_31 : f32 to vector<2x2xf32>
    %38 = arith.maximumf %36, %37 : vector<2x2xf32>
    %39 = arith.divf %35, %38 : vector<2x2xf32>
    %40 = vector.extract_strided_slice %30 {offsets = [0, 0, 0], sizes = [2, 8, 1], strides = [1, 1, 1]} : vector<2x8x2xf32> to vector<2x8x1xf32>
    %41 = vector.broadcast %40 : vector<2x8x1xf32> to vector<2x8x32xf32>
    %42 = arith.mulf %41, %0 : vector<2x8x32xf32>
    %cst_32 = arith.constant dense<0.000000e+00> : vector<2x32xf32>
    %43 = vector.multi_reduction <add>, %42, %cst_32 [1] : vector<2x8x32xf32> to vector<2x32xf32>
    %cst_33 = arith.constant 1.250000e-01 : f32
    %44 = vector.broadcast %cst_33 : f32 to vector<2x32xf32>
    %45 = arith.mulf %43, %44 : vector<2x32xf32>
    %cst_34 = arith.constant dense<0.000000e+00> : vector<2x32xf32>
    %46 = vector.multi_reduction <add>, %0, %cst_34 [1] : vector<2x8x32xf32> to vector<2x32xf32>
    %cst_35 = arith.constant 1.250000e-01 : f32
    %47 = vector.broadcast %cst_35 : f32 to vector<2x32xf32>
    %48 = arith.mulf %46, %47 : vector<2x32xf32>
    %49 = tpu.concatenate %45, %48 in 0 : vector<2x32xf32>, vector<2x32xf32> -> vector<4x32xf32>
    %cst_36 = arith.constant dense<0.000000e+00> : vector<4x32xf32>
    %50 = tpu.matmul %49, %6, %cst_36 {dimension_numbers = #tpu.dot_dimension_numbers<[1], [0], [0], [1], [0, 0, 1, 1], [], []>} : vector<4x32xf32>, vector<32x32xf32>, vector<4x32xf32> -> vector<4x32xf32>
    %51 = vector.broadcast %7 : vector<1x32xf32> to vector<4x32xf32>
    %52 = arith.addf %50, %51 : vector<4x32xf32>
    %cst_37 = arith.constant 0.000000e+00 : f32
    %53 = vector.broadcast %cst_37 : f32 to vector<4x32xf32>
    %54 = arith.maximumf %52, %53 : vector<4x32xf32>
    %cst_38 = arith.constant dense<0.000000e+00> : vector<4x4xf32>
    %55 = tpu.matmul %54, %8, %cst_38 {dimension_numbers = #tpu.dot_dimension_numbers<[1], [0], [0], [1], [0, 0, 1, 1], [], []>} : vector<4x32xf32>, vector<32x4xf32>, vector<4x4xf32> -> vector<4x4xf32>
    %56 = vector.broadcast %9 : vector<1x4xf32> to vector<4x4xf32>
    %57 = arith.addf %55, %56 : vector<4x4xf32>
    %58 = vector.extract_strided_slice %57 {offsets = [0, 0], sizes = [2, 4], strides = [1, 1]} : vector<4x4xf32> to vector<2x4xf32>
    %59 = vector.extract_strided_slice %57 {offsets = [2, 0], sizes = [2, 4], strides = [1, 1]} : vector<4x4xf32> to vector<2x4xf32>
    %cst_39 = arith.constant 0.000000e+00 : f32
    %60 = vector.broadcast %cst_39 : f32 to vector<2x54xf32>
    %61 = tpu.concatenate %58, %59, %45, %48, %39, %60 in 1 : vector<2x4xf32>, vector<2x4xf32>, vector<2x32xf32>, vector<2x32xf32>, vector<2x2xf32>, vector<2x54xf32> -> vector<2x128xf32>
    %c0_40 = arith.constant 0 : index
    %c0_41 = arith.constant 0 : index
    %c0_42 = arith.constant 0 : index
    %62 = vector.load %arg11[%c0_40, %c0_41, %c0_42] : memref<2x1x128xf32, #tpu.memory_space<vmem>>, vector<2x1x128xf32>
    %63 = vector.shape_cast %62 : vector<2x1x128xf32> to vector<2x128xf32>
    %64 = vector.shape_cast %61 : vector<2x128xf32> to vector<2x1x128xf32>
    tpu.vector_store %arg11[%c0_40, %c0_41, %c0_42], %64 {strides = array<i32>} : memref<2x1x128xf32, #tpu.memory_space<vmem>>, vector<2x1x128xf32>,
    return
  }
  func.func @transform_0(%arg0: i32) -> (i32, i32, i32) {
    %c0_i32 = arith.constant 0 : i32
    %c0_i32_0 = arith.constant 0 : i32
    %c0_i32_1 = arith.constant 0 : i32
    return %arg0, %c0_i32, %c0_i32_0 : i32, i32, i32
  }
  func.func @transform_1(%arg0: i32) -> (i32, i32, i32) {
    %c0_i32 = arith.constant 0 : i32
    %c0_i32_0 = arith.constant 0 : i32
    %c0_i32_1 = arith.constant 0 : i32
    return %arg0, %c0_i32, %c0_i32_0 : i32, i32, i32
  }
  func.func @transform_2(%arg0: i32) -> (i32, i32) {
    %c0_i32 = arith.constant 0 : i32
    %c0_i32_0 = arith.constant 0 : i32
    %c0_i32_1 = arith.constant 0 : i32
    return %c0_i32, %c0_i32_0 : i32, i32
  }
  func.func @transform_3(%arg0: i32) -> (i32, i32) {
    %c0_i32 = arith.constant 0 : i32
    %c0_i32_0 = arith.constant 0 : i32
    %c0_i32_1 = arith.constant 0 : i32
    return %c0_i32, %c0_i32_0 : i32, i32
  }
  func.func @transform_4(%arg0: i32) -> (i32, i32) {
    %c0_i32 = arith.constant 0 : i32
    %c0_i32_0 = arith.constant 0 : i32
    %c0_i32_1 = arith.constant 0 : i32
    return %c0_i32, %c0_i32_0 : i32, i32
  }
  func.func @transform_5(%arg0: i32) -> (i32, i32) {
    %c0_i32 = arith.constant 0 : i32
    %c0_i32_0 = arith.constant 0 : i32
    %c0_i32_1 = arith.constant 0 : i32
    return %c0_i32, %c0_i32_0 : i32, i32
  }
  func.func @transform_6(%arg0: i32) -> (i32, i32) {
    %c0_i32 = arith.constant 0 : i32
    %c0_i32_0 = arith.constant 0 : i32
    %c0_i32_1 = arith.constant 0 : i32
    return %c0_i32, %c0_i32_0 : i32, i32
  }
  func.func @transform_7(%arg0: i32) -> (i32, i32) {
    %c0_i32 = arith.constant 0 : i32
    %c0_i32_0 = arith.constant 0 : i32
    %c0_i32_1 = arith.constant 0 : i32
    return %c0_i32, %c0_i32_0 : i32, i32
  }
  func.func @transform_8(%arg0: i32) -> (i32, i32) {
    %c0_i32 = arith.constant 0 : i32
    %c0_i32_0 = arith.constant 0 : i32
    %c0_i32_1 = arith.constant 0 : i32
    return %c0_i32, %c0_i32_0 : i32, i32
  }
  func.func @transform_9(%arg0: i32) -> (i32, i32) {
    %c0_i32 = arith.constant 0 : i32
    %c0_i32_0 = arith.constant 0 : i32
    %c0_i32_1 = arith.constant 0 : i32
    return %c0_i32, %c0_i32_0 : i32, i32
  }
  func.func @transform_10(%arg0: i32) -> (i32, i32, i32) {
    %c0_i32 = arith.constant 0 : i32
    %c0_i32_0 = arith.constant 0 : i32
    %c0_i32_1 = arith.constant 0 : i32
    return %arg0, %c0_i32, %c0_i32_0 : i32, i32, i32
  }
  func.func @transform_11(%arg0: i32) -> (i32, i32) {
    %c0_i32 = arith.constant 0 : i32
    %c0_i32_0 = arith.constant 0 : i32
    return %arg0, %c0_i32 : i32, i32
  }
}

</mosaic_0001>

<bundles_post_ra>
// kernel: gib_forward.1
= control target key start
LH: loop header
LB: loop body
LE: loop exit
PB: predicated region body
PF: predicated region fallthrough
CT: control target
= control target key end

     0   :  { %17 = vsyncpa [#allocation3], 0  ;;  %s1188_s0 = inlined_call_operand.vmem [shape: f32[2,8,32], index: 0, kind: input, shape index: {}]   ;;  %s1189_s1 = inlined_call_operand.vmem [shape: bf16[2,8,8], index: 1, kind: input, shape index: {}]   ;;  %s1190_s2 = inlined_call_operand.vmem [shape: f32[32,32], index: 2, kind: input, shape index: {}]   ;;  %s1191_s3 = inlined_call_operand.vmem [shape: f32[1,32], index: 3, kind: input, shape index: {}]   ;;  %s1192_s4 = inlined_call_operand.vmem [shape: f32[32,2], index: 4, kind: input, shape index: {}]   ;;  %s1193_s5 = inlined_call_operand.hbm [shape: f32[1,2], index: 5, kind: input, shape index: {}]   ;;  %s1194_s6 = inlined_call_operand.vmem [shape: f32[32,32], index: 6, kind: input, shape index: {}]   ;;  %s1195_s7 = inlined_call_operand.hbm [shape: f32[1,32], index: 7, kind: input, shape index: {}]   ;;  %s1196_s8 = inlined_call_operand.vmem [shape: f32[32,4], index: 8, kind: input, shape index: {}]   ;;  %s1197_s9 = inlined_call_operand.hbm [shape: f32[1,4], index: 9, kind: input, shape index: {}]   ;;  %s1198_s10 = inlined_call_operand.vmem [shape: f32[2,1,128], index: 10, kind: output, shape index: {0}]   ;;  %s1199_s11 = inlined_call_operand.vmem [shape: f32[16,2], index: 11, kind: output, shape index: {1}]  }
   0x1   :  { %18 = vsyncpa [#allocation5], 0  ;;  %s962_s17 = smov [#allocation4]   ;;  %s963_s19 = smov [#allocation2]  }
   0x2   :  { %s47_s18 = sshll.u32 %s962_s17, 4  ;;  %s35_s20 = sshll.u32 %s963_s19, 4  ;;  %s48_s18 = int_to_ptr.vmem [resolvable:$true] %s47_s18  ;;  %s36_s20 = int_to_ptr.vmem [resolvable:$true] %s35_s20 }
   0x3   :  { %s906_s21 = scalar_lea.vmem %s48_s18, 16  ;;  %s910_s22 = scalar_lea.vmem %s48_s18, 32 }
   0x4   :  { %p907_p0 = scmp.ne.s32.totalorder %s48_s18, %s906_s21  ;;  %p911_p1 = scmp.lt.s32.totalorder %s48_s18, %s48_s18 }
   0x5   :  { %p912_p2 = scmp.lt.s32.totalorder %s910_s22, %s906_s21 }
   0x7   :  { %p913_p3 = por %p912_p2, %p911_p1 }
   0x9   :  { %p914_p4 = pnand %p913_p3, %p907_p0 }
   0xb   :  { %917 = shalt.err (!%p914_p4)
}
   0xc   :  { %50 = dma.hbm_to_vmem [thread:$0]  %s1195_s7, 16, %s48_s18, [#allocation5]  }
   0xd   :  { %s926_s25 = scalar_lea.vmem %s36_s20, 16  ;;  %s930_s26 = scalar_lea.vmem %s36_s20, 32 }
   0xe   :  { %p927_p5 = scmp.ne.s32.totalorder %s36_s20, %s926_s25  ;;  %p931_p6 = scmp.lt.s32.totalorder %s36_s20, %s36_s20 }
   0xf   :  { %p932_p7 = scmp.lt.s32.totalorder %s930_s26, %s926_s25 }
  0x11   :  { %p933_p8 = por %p932_p7, %p931_p6 }
  0x13   :  { %p934_p9 = pnand %p933_p8, %p927_p5 }
  0x15   :  { %937 = shalt.err (!%p934_p9)
}
  0x16   :  { %38 = dma.hbm_to_vmem [thread:$0]  %s1193_s5, 16, %s36_s20, [#allocation3]  }
  0x17   :  { %s964_s29 = smov [#allocation6]  }
  0x18   :  { %s59_s30 = sshll.u32 %s964_s29, 4  ;;  %s60_s30 = int_to_ptr.vmem [resolvable:$true] %s59_s30 }
  0x19   :  { %s946_s12 = scalar_lea.vmem %s60_s30, 16  ;;  %s950_s13 = scalar_lea.vmem %s60_s30, 32 }
  0x1a   :  { %p947_p10 = scmp.ne.s32.totalorder %s60_s30, %s946_s12  ;;  %p951_p11 = scmp.lt.s32.totalorder %s60_s30, %s60_s30 }
  0x1b   :  { %p952_p12 = scmp.lt.s32.totalorder %s950_s13, %s946_s12 }
  0x1d   :  { %p953_p13 = por %p952_p12, %p951_p11 }
  0x1f   :  { %p954_p0 = pnand %p953_p13, %p947_p10 }
  0x21   :  { %957 = shalt.err (!%p954_p0)
}
  0x22   :  { %62 = dma.hbm_to_vmem [thread:$0]  %s1197_s9, 16, %s60_s30, [#allocation5]  }
  0x23   :  { %958 = dma.done.wait [#allocation3], 16  }
  0x24   :  { %959 = vsyncadd [#allocation3], 4294967280 }
  0x25   :  { %960 = dma.done.wait [#allocation5], 32  }
  0x26   :  { %961 = vsyncadd [#allocation5], 4294967264  ;;  %vm100_vm0 = vcmask 261120   ;;  %v77_v0 = vld [vmem:[%s1190_s2 + $0x18] sm:$0xff]  ;;  %v76_v1 = vld [vmem:[%s1190_s2 + $0x10] sm:$0xff]  ;;  %v966_v31 = vmov 0  }
  0x27   :  { %817 = vmatprep.subr.mxu0 %v77_v0  ;;  %v1053_v2 = vld [vmem:[%s1188_s0] sm:$0xff]  ;;  %v75_v3 = vld [vmem:[%s1190_s2 + $0x8] sm:$0xff]  ;;  %v82_v6 = vld [vmem:[%s1192_s4 + $0x18] sm:$0xff]  ;;  %884 = vset.pattern.permute.xlu0 %v966_v31  ;;  %v967_v32 = vmov 0.0   ;;  %vm968_vm1 = vmmov 0   ;;  %vm301_vm2 = vcmask 7168  }
  0x28   :  { %818 = vmatpush3.msra.mxu0 %v77_v0  ;;  %825 = vmatprep.mubr.msk.f32.mxu0 %vm100_vm0, %v1053_v2  ;;  %v74_v4 = vld [vmem:[%s1190_s2] sm:$0xff]  ;;  %v1066_v5 = vld [vmem:[%s1188_s0 + $0x8] sm:$0xff]  ;;  %v81_v7 = vld [vmem:[%s1192_s4 + $0x10] sm:$0xff]  ;;  %vm304_vm3 = vcmask 15360   ;;  %vm311_vm4 = vcmask 64512   ;;  %v522_v49 = vsel %vm100_vm0, %v1053_v2, 0.0 }
  0x29   :  { %819 = vmatprep.subr.mxu0 %v76_v1  ;;  %828 = vmatprep.subr.mxu1 %v82_v6  ;;  %v80_v8 = vld [vmem:[%s1192_s4 + $0x8] sm:$0xff]  ;;  %v79_v9 = vld [vmem:[%s1192_s4] sm:$0xff]  ;;  %s965_s4 = smov 1   ;;  %v87_v45 = vld [vmem:[%s1194_s6 + $0x18] sm:$0xff]  ;;  %v529_v50 = vsel %vm100_vm0, %v1066_v5, 0.0  ;;  %v523_v51 = vrot.slane %v522_v49, 4 }
  0x2a   :  { %820 = vmatpush3.msra.mxu0 %v76_v1  ;;  %829 = vmatpush3.msra.mxu1 %v82_v6  ;;  %v773_v10 = vld [vmem:[%s1191_s3] ss:$0 sm:$0xff]  ;;  %s969_s3 = smov 127   ;;  %v86_v46 = vld [vmem:[%s1194_s6 + $0x10] sm:$0xff]  ;;  %v85_v47 = vld [vmem:[%s1194_s6 + $0x8] sm:$0xff]  ;;  %v530_v52 = vrot.slane %v529_v50, 4 }
  0x2b   :  { %821 = vmatprep.subr.mxu0 %v75_v3  ;;  %830 = vmatprep.subr.mxu1 %v81_v7  ;;  %v776_v18 = vld [vmem:[#allocation2] ss:$0 sm:$0xff]  ;;  %v524_v53 = vadd.f32 %v523_v51, %v522_v49  ;;  %vm545_vm5 = vcmask 1043459   ;;  %vm540_vm6 = vcmask 1041409   ;;  %vm548_vm7 = vcmask 1041408   ;;  %s970_s24 = smov 8  }
  0x2c   :  { %822 = vmatpush3.msra.mxu0 %v75_v3  ;;  %831 = vmatpush3.msra.mxu1 %v81_v7  ;;  %v788_v36 = vld [vmem:[%s1189_s1] sm:$0xff]   ;;  %v531_v54 = vadd.f32 %v530_v52, %v529_v50  ;;  %s971_s29 = smov 72   ;;  %s973_s30 = smov 40   ;;  %vm727_vm8 = vcmask 31744   ;;  %vm730_vm9 = vcmask 326656   ;;  %vm732_vm10 = vcmask 588800  }
  0x2d   :  { %823 = vmatprep.subr.mxu0 %v74_v4  ;;  %832 = vmatprep.subr.mxu1 %v80_v8  ;;  %v789_v38 = vunpack.c.l.bf16 %v788_v36  ;;  %v790_v42 = vunpack.c.h.bf16 %v788_v36  ;;  %v84_v48 = vld [vmem:[%s1194_s6] sm:$0xff]  ;;  %v525_v55 = vrot.slane %v524_v53, 2  ;;  %vm734_vm11 = vcmask 605184  }
  0x2e   :  { %824 = vmatpush3.msra.mxu0 %v74_v4  ;;  %833 = vmatpush3.msra.mxu1 %v80_v8  ;;  %v532_v56 = vrot.slane %v531_v54, 2 }
  0x2f   :  { %826 = vmatmul.mubr.msk.f32.vlgmr.msra.gmra.mxu0 %vm100_vm0, %v1066_v5  ;;  %834 = vmatprep.subr.mxu1 %v79_v9  ;;  %v526_v60 = vadd.f32 %v525_v55, %v524_v53  ;;  %v91_v53 = vld [vmem:[%s1196_s8 + $0x10] sm:$0xff]  ;;  %v90_v55 = vld [vmem:[%s1196_s8 + $0x8] sm:$0xff] }
  0x30   :  { %835 = vmatpush3.msra.mxu1 %v79_v9  ;;  %839 = vmatprep.subr.mxu0 %v967_v32  ;;  %v533_v61 = vadd.f32 %v532_v56, %v531_v54  ;;  %v92_v9 = vld [vmem:[%s1196_s8 + $0x18] sm:$0xff] }
  0x31   :  { %841 = vmatprep.mubr.msk.f32.mxu0 %vm968_vm1, %v967_v32  ;;  %885 = vset.pattern.permute.xlu1 %v966_v31  ;;  %v527_v4 = vrot.slane %v526_v60, 1 }
  0x32   :  { %844 = vmatprep.subr.mxu1 %v967_v32  ;;  %v534_v6 = vrot.slane %v533_v61, 1 }
  0xef   :  { %v827_v11 = vpop.f32.mrf.mxu0 }
  0xf0   :  { %v179_v12 = vadd.f32 %v827_v11, %v773_v10  ;;  %v528_v11 = vadd.f32 %v527_v4, %v526_v60 }
  0xf1   :  { %v173_v13 = vpop.f32.mrf.mxu0 }
  0xf2   :  { %v174_v14 = vadd.f32 %v773_v10, %v173_v13  ;;  %v183_v16 = vmax.f32 %v179_v12, 0.0  ;;  %v535_v12 = vadd.f32 %v534_v6, %v533_v61 }
  0xf4   :  { %v182_v15 = vmax.f32 %v174_v14, 0.0 }
  0xf6   :  { %836 = vmatprep.mubr.msk.f32.mxu1 %vm100_vm0, %v182_v15  ;;  %v1151_v15 = vmul.f32 0.125, %v528_v11  ;;  %v783_v11 = vld [vmem:[#allocation6] ss:$0 sm:$0xff] }
  0xf7   :  { %837 = vmatmul.mubr.msk.f32.vlgmr.msra.gmra.mxu1 %vm100_vm0, %v183_v16 }
  0xf8   :  { %846 = vmatprep.mubr.msk.f32.mxu1 %vm968_vm1, %v967_v32 }
 0x1b7   :  { %v838_v17 = vpop.f32.mrf.mxu1 }
 0x1b8   :  { %v268_v21 = vadd.f32 %v838_v17, %v776_v18 }
 0x1b9   :  { %v262_v19 = vpop.f32.mrf.mxu1 }
 0x1ba   :  { %v263_v20 = vadd.f32 %v776_v18, %v262_v19  ;;  %v1153_v18 = vmul.f32 0.125, %v535_v12 }
 0x1bc   :  { %273 = vrot.lane.b32.xlu0 %v263_v20, %s965_s4 }
 0x1c0   :  { %275 = vrot.lane.b32.xlu0 %v268_v21, %s965_s4 }
 0x22e   :  { %v274_v22 = vpop.permute.xlu0 %273 }
 0x22f   :  { %v279_v23 = vsub.f32 %v263_v20, %v274_v22  ;;  %v546_v22 = vsel %vm545_vm5, %v1153_v18, %v1151_v15 }
 0x231   :  { %v281_v24 = vmul.f32 1.442695, %v279_v23 }
 0x232   :  { %v276_v25 = vpop.permute.xlu0 %275 }
 0x233   :  { %886 = vpow2.f32 %v281_v24  ;;  %v280_v26 = vsub.f32 %v268_v21, %v276_v25 }
 0x235   :  { %v283_v27 = vmul.f32 1.442695, %v280_v26 }
 0x237   :  { %888 = vpow2.f32 %v283_v27 }
 0x240   :  { %v887_v28 = vpop.eup %886 }
 0x241   :  { %v285_v29 = vadd.f32 1.0, %v887_v28 }
 0x243   :  { %890 = vrcp.f32 %v285_v29 }
 0x244   :  { %v889_v30 = vpop.eup %888 }
 0x245   :  { %v286_v33 = vadd.f32 1.0, %v889_v30 }
 0x247   :  { %892 = vrcp.f32 %v286_v33 }
 0x250   :  { %v891_v34 = vpop.eup %890 }
 0x251   :  { %295 = vrot.lane.b32.xlu1 %v891_v34, %s969_s3  ;;  %v291_v37 = vsub.f32 1.0, %v891_v34 }
 0x254   :  { %v893_v35 = vpop.eup %892 }
 0x255   :  { %297 = vrot.lane.b32.xlu1 %v893_v35, %s969_s3  ;;  %v292_v41 = vsub.f32 1.0, %v893_v35 }
 0x2c3   :  { %v296_v39 = vpop.permute.xlu1 %295 }
 0x2c4   :  { %v1097_v40 = vsel %vm301_vm2, %v296_v39, %v291_v37 }
 0x2c5   :  { %305 = vst.msk [vmem:[%s1199_s11] sm:$0xff] %vm304_vm3, %v1097_v40  ;;  %496 = vperm.xlu0 %884, %v1097_v40   ;;  %840 = vmatpush3.msra.mxu0 %v1097_v40 }
 0x2c6   :  { %842 = vmatmul.mubr.msk.f32.vlgmr.msra.gmra.mxu0 %vm311_vm4, %v789_v38  ;;  %849 = vmatprep.subr.mxu0 %v967_v32 }
 0x2c7   :  { %v298_v43 = vpop.permute.xlu1 %297  ;;  %857 = vmatprep.mubr.msk.f32.mxu0 %vm968_vm1, %v967_v32  ;;  %850 = vmatpush3.msra.mxu0 %v87_v45 }
 0x2c8   :  { %v1111_v44 = vsel %vm301_vm2, %v298_v43, %v292_v41  ;;  %851 = vmatprep.subr.mxu0 %v967_v32 }
 0x2c9   :  { %306 = vst.msk [vmem:[%s1199_s11 + $0x8] sm:$0xff] %vm304_vm3, %v1111_v44  ;;  %501 = vperm.xlu1 %885, %v1111_v44   ;;  %845 = vmatpush3.msra.mxu1 %v1111_v44 }
 0x2ca   :  { %847 = vmatmul.mubr.msk.f32.vlgmr.msra.gmra.mxu1 %vm311_vm4, %v790_v42  ;;  %860 = vmatprep.subr.mxu1 %v967_v32 }
 0x2cb   :  { %868 = vmatprep.mubr.msk.f32.mxu1 %vm968_vm1, %v967_v32  ;;  %852 = vmatpush3.msra.mxu0 %v86_v46 }
 0x2cc   :  { %853 = vmatprep.subr.mxu0 %v967_v32  ;;  %861 = vmatpush3.msra.mxu1 %v92_v9 }
 0x2cd   :  { %854 = vmatpush3.msra.mxu0 %v85_v47  ;;  %862 = vmatprep.subr.mxu1 %v967_v32 }
 0x2ce   :  { %855 = vmatprep.subr.mxu0 %v967_v32  ;;  %863 = vmatpush3.msra.mxu1 %v91_v53 }
 0x2cf   :  { %856 = vmatpush3.msra.mxu0 %v84_v48  ;;  %864 = vmatprep.subr.mxu1 %v967_v32 }
 0x2d0   :  { %865 = vmatpush3.msra.mxu1 %v90_v55 }
 0x2d1   :  { %866 = vmatprep.subr.mxu1 %v967_v32  ;;  %v781_v32 = vld [vmem:[#allocation4] ss:$0 sm:$0xff] }
 0x340   :  { %v497_v57 = vpop.permute.xlu0 %496 }
 0x341   :  { %v504_v58 = vmul.f32 %v497_v57, %v1053_v2 }
 0x343   :  { %v506_v59 = vsel %vm100_vm0, %v504_v58, 0.0  ;;  %v89_v58 = vld [vmem:[%s1196_s8] sm:$0xff]  ;;  %s972_s8 = smov 4  }
 0x344   :  { %v507_v62 = vrot.slane %v506_v59, 4  ;;  %v502_v63 = vpop.permute.xlu1 %501  ;;  %867 = vmatpush3.msra.mxu1 %v89_v58 }
 0x345   :  { %v505_v0 = vmul.f32 %v502_v63, %v1066_v5 }
 0x346   :  { %v508_v1 = vadd.f32 %v507_v62, %v506_v59 }
 0x347   :  { %v513_v3 = vsel %vm100_vm0, %v505_v0, 0.0 }
 0x348   :  { %v509_v7 = vrot.slane %v508_v1, 2  ;;  %v514_v8 = vrot.slane %v513_v3, 4 }
 0x34a   :  { %v510_v2 = vadd.f32 %v509_v7, %v508_v1  ;;  %v515_v10 = vadd.f32 %v514_v8, %v513_v3 }
 0x34c   :  { %v511_v13 = vrot.slane %v510_v2, 1  ;;  %v516_v5 = vrot.slane %v515_v10, 2 }
 0x34e   :  { %v517_v14 = vadd.f32 %v516_v5, %v515_v10  ;;  %v512_v17 = vadd.f32 %v511_v13, %v510_v2 }
 0x350   :  { %v518_v16 = vrot.slane %v517_v14, 1  ;;  %v520_v20 = vmul.f32 0.125, %v512_v17  ;;  %v974_v17 = vmov 1966171168  }
 0x352   :  { %v519_v19 = vadd.f32 %v518_v16, %v517_v14  ;;  %v717_v16 = vsel %vm540_vm6, %v1153_v18, %v1151_v15 }
 0x354   :  { %v521_v21 = vmul.f32 0.125, %v519_v19  ;;  %v738_v19 = vunpack.c.l.s4 %v974_v17 }
 0x356   :  { %v541_v23 = vsel %vm540_vm6, %v521_v21, %v520_v20  ;;  %v740_v20 = vlaneseq }
 0x357   :  { %714 = vrot.lane.b32.xlu0 %v541_v23, %s970_s24  ;;  %v549_v24 = vsel %vm548_vm7, %v541_v23, %v546_v22  ;;  %v739_v22 = vunpack.c.0.s8 %v738_v19 }
 0x358   :  { %858 = vmatmul.mubr.msk.f32.vlgmr.msra.gmra.mxu0 %vm100_vm0, %v549_v24  ;;  %v741_v23 = vshrl.u32 %v740_v20, 7 }
 0x386   :  { %v381_v25 = vpop.f32.mrf.mxu0 }
 0x387   :  { %v474_v26 = vsel %vm304_vm3, %v381_v25, 0.0  ;;  %v458_v31 = vmul.f32 %v381_v25, %v1097_v40 }
 0x388   :  { %v475_v27 = vrot.slane %v474_v26, 4  ;;  %v843_v28 = vpop.f32.mrf.mxu0 }
 0x389   :  { %v460_v41 = vsel %vm304_vm3, %v458_v31, 0.0 }
 0x38a   :  { %v476_v29 = vadd.f32 %v475_v27, %v474_v26  ;;  %v454_v30 = vpop.f32.mrf.mxu1  ;;  %v461_v46 = vrot.slane %v460_v41, 4  ;;  %v742_v27 = vsub.s32 %v739_v22, %v741_v23 }
 0x38b   :  { %v459_v33 = vmul.f32 %v454_v30, %v1111_v44  ;;  %v481_v34 = vsel %vm304_vm3, %v454_v30, 0.0 }
 0x38c   :  { %v477_v35 = vrot.slane %v476_v29, 2  ;;  %v482_v36 = vrot.slane %v481_v34, 4  ;;  %v848_v37 = vpop.f32.mrf.mxu1  ;;  %v462_v44 = vadd.f32 %v461_v46, %v460_v41 }
 0x38d   :  { %v467_v42 = vsel %vm304_vm3, %v459_v33, 0.0 }
 0x38e   :  { %v478_v38 = vadd.f32 %v477_v35, %v476_v29  ;;  %v483_v39 = vadd.f32 %v482_v36, %v481_v34  ;;  %v468_v48 = vrot.slane %v467_v42, 4  ;;  %v463_v56 = vrot.slane %v462_v44, 2 }
 0x390   :  { %v479_v43 = vrot.slane %v478_v38, 1  ;;  %v484_v45 = vrot.slane %v483_v39, 2  ;;  %v469_v51 = vadd.f32 %v468_v48, %v467_v42  ;;  %v464_v59 = vadd.f32 %v463_v56, %v462_v44 }
 0x392   :  { %v480_v47 = vadd.f32 %v479_v43, %v478_v38  ;;  %v485_v49 = vadd.f32 %v484_v45, %v483_v39  ;;  %v470_v57 = vrot.slane %v469_v51, 2  ;;  %v465_v61 = vrot.slane %v464_v59, 1 }
 0x394   :  { %v488_v40 = vmax.f32 %v480_v47, 1e-05  ;;  %v486_v50 = vrot.slane %v485_v49, 1  ;;  %v471_v60 = vadd.f32 %v470_v57, %v469_v51  ;;  %v466_v0 = vadd.f32 %v465_v61, %v464_v59 }
 0x396   :  { %v487_v52 = vadd.f32 %v486_v50, %v485_v49  ;;  %894 = vrcp.f32 %v488_v40  ;;  %v472_v62 = vrot.slane %v471_v60, 1 }
 0x398   :  { %v489_v54 = vmax.f32 %v487_v52, 1e-05  ;;  %v473_v1 = vadd.f32 %v472_v62, %v471_v60 }
 0x39a   :  { %896 = vrcp.f32 %v489_v54 }
 0x3a3   :  { %v895_v63 = vpop.eup %894 }
 0x3a4   :  { %v491_v4 = vmul.f32 %v895_v63, %v466_v0 }
 0x3a7   :  { %v897_v3 = vpop.eup %896 }
 0x3a8   :  { %v493_v6 = vmul.f32 %v897_v3, %v473_v1 }
 0x3aa   :  { %v723_v7 = vsel %vm540_vm6, %v493_v6, %v491_v4 }
 0x3ab   :  { %724 = vrot.lane.b32.xlu0 %v723_v7, %s971_s29 }
 0x3c9   :  { %v715_v24 = vpop.permute.xlu0 %714 }
 0x418   :  { %v625_v8 = vpop.f32.mrf.mxu0 }
 0x419   :  { %v626_v9 = vadd.f32 %v781_v32, %v625_v8 }
 0x41a   :  { %v859_v2 = vpop.f32.mrf.mxu0 }
 0x41b   :  { %v629_v10 = vmax.f32 %v626_v9, 0.0 }
 0x41d   :  { %869 = vmatmul.mubr.msk.f32.vlgmr.msra.gmra.mxu1 %vm100_vm0, %v629_v10  ;;  %v725_v29 = vpop.permute.xlu0 %724 }
 0x4dd   :  { %v705_v12 = vpop.f32.mrf.mxu1 }
 0x4de   :  { %v706_v13 = vadd.f32 %v783_v11, %v705_v12 }
 0x4df   :  { %v870_v5 = vpop.f32.mrf.mxu1 }
 0x4e0   :  { %v710_v14 = vrot.slane %v706_v13, 2 }
 0x4e2   :  { %711 = vrot.lane.b32.xlu1 %v710_v14, %s972_s8 }
 0x4e6   :  { %718 = vrot.lane.b32.xlu1 %v717_v16, %s973_s30 }
 0x554   :  { %v712_v21 = vpop.permute.xlu1 %711 }
 0x555   :  { %v728_v25 = vsel %vm727_vm8, %v706_v13, %v712_v21 }
 0x556   :  { %v729_v26 = vsel %vm311_vm4, %v728_v25, %v715_v24 }
 0x558   :  { %v719_v28 = vpop.permute.xlu1 %718 }
 0x559   :  { %v731_v15 = vsel %vm730_vm9, %v729_v26, %v719_v28 }
 0x55a   :  { %v733_v18 = vsel %vm732_vm10, %v731_v15, %v725_v29 }
 0x55b   :  { %v735_v30 = vsel %vm734_vm11, %v733_v18, 0.0 }
 0x55c   :  { %v743_v31 = vrot.slane %v735_v30, %v742_v27 }
 0x55e   :  { %v744_v33 = vcombine.high %v743_v31, %v743_v31  ;;  %785 = vst.sshfl [vmem:[%s1198_s10] sm:$0x1 pattern:$0x73625140] %v743_v31 }
 0x560   :  { %786 = vst.sshfl [vmem:[%s1198_s10 + $0x1] sm:$0x1 pattern:$0x73625140] %v744_v33 }
 0x561   :  { %771 = vsyncpa [#allocation3], 1 }
 0x562   :  { %772 = vsyncpa [#allocation5], 1 }

</bundles_post_ra>
